<compile_context>
chip_gen: v6e
topology: v6e:2x2x1
jax: 0.10.0
libtpu: 0.0.40
codegen_flags: <defaults>
</compile_context>

<pallas_src>
import functools

import jax
import jax.numpy as jnp
from jax.experimental import pallas as pl
from jax.experimental.pallas import tpu as pltpu


# -------------------------- Pass 1: expansion + random projection --------------------------

def _expand_project_kernel(x_ref, sel_out_ref, sel_in_ref, p_cross_ref, p_lin_ref,
                           p_const_ref, f_ref, *, scale, poly_c):
    """F_tile = phi(x_tile * scale) @ P, computed as a value (no scratch, no masked stores).

    cross[:, i*d + j] = x_i * x_j is built from two selector matmuls:
      rep = x @ S_out  (column i*d+j holds x_i),   til = x @ S_in  (column i*d+j holds x_j)
    so the only lane-expansion work runs on the MXU instead of masked vector stores.
    The projection is split so the main contraction dim is exactly d*d (lane-dense,
    no zero-padded lanes): F = cross @ P_cross + (sqrt(2c)*x) @ P_lin + c * P_const.
    """
    x = x_ref[...] * scale                                   # (T, d) f32 (VPU math in f32)
    xb = x.astype(jnp.bfloat16)

    rep = jnp.dot(xb, sel_out_ref[...], preferred_element_type=jnp.float32)   # (T, d*d)
    til = jnp.dot(xb, sel_in_ref[...], preferred_element_type=jnp.float32)    # (T, d*d)
    cross = (rep * til).astype(jnp.bfloat16)                                  # x_i * x_j

    f = jnp.dot(cross, p_cross_ref[...], preferred_element_type=jnp.float32)
    f += jnp.dot((x * ((2.0 * poly_c) ** 0.5)).astype(jnp.bfloat16), p_lin_ref[...],
                 preferred_element_type=jnp.float32)
    f += poly_c * p_const_ref[...]                           # (1, out_dim) f32 broadcast

    f_ref[...] = f.astype(jnp.bfloat16)                      # pass 2 consumes bf16 F


# -------------------------- Pass 2: neighbor sum + combine --------------------------

def _aggregate_kernel(adj_ref, f_all_ref, f_self_ref, o_ref, acc_ref):
    """out_tile = A_row_tile @ F + F_row_tile   (cat_scale == 0.0 default combine).

    adj_ref   : (TM, TK) int8 adjacency block, streamed/double-buffered by the pipeline.
    f_all_ref : (TK, out_dim) bf16 contraction block of F.
    f_self_ref: (TM, out_dim) bf16 row tile of F (self term; bf16 add is within tolerance).
    acc_ref   : (TM, out_dim) f32 accumulator scratch across the K grid axis.
    """
    k = pl.program_id(1)

    @pl.when(k == 0)
    def _init():
        acc_ref[...] = jnp.zeros_like(acc_ref)

    # int8 -> f32 -> bf16: cheap VPU cast, hidden under the adjacency DMA (mem-bound pass);
    # two-step cast keeps the lowering simple. 0/1 edges are exact in every dtype here.
    a = adj_ref[...].astype(jnp.float32).astype(jnp.bfloat16)
    acc_ref[...] += jnp.dot(a, f_all_ref[...], preferred_element_type=jnp.float32)

    @pl.when(k == pl.num_programs(1) - 1)
    def _finalize():
        o_ref[...] = acc_ref[...] + f_self_ref[...].astype(jnp.float32)


# -------------------------- VMEM budgeting & tile selection --------------------------

def _vmem_limit_bytes():
    """Per-generation scoped VMEM limit: ~70% of physical, capped.
    v5e/v6e (128 MiB) -> ~90 MiB, v7x (64 MiB) -> ~45 MiB."""
    try:
        phys = pltpu.get_tpu_info().vmem_capacity_bytes
    except Exception:
        phys = 64 * 1024 * 1024          # conservative (v7x-sized) fallback
    return int(min(int(phys * 0.7), 100 * 1024 * 1024))


def _pick_tiles(n, out_dim, budget_bytes):
    """Row tile (tm) and contraction tile (tk) for the aggregation pass, chosen so the
    pipelined buffers fit the VMEM budget (double-buffered int8 adjacency + bf16 F blocks
    + f32 output tile + f32 accumulator scratch). Prefers >= 4 row tiles so the
    "parallel" axis keeps both v7x TensorCores busy; otherwise takes the biggest block."""
    def fits(tm, tk):
        vmem = (2 * tm * tk * 1            # adjacency tiles, int8, double-buffered
                + 2 * tk * out_dim * 2     # F contraction blocks, bf16
                + 2 * tm * out_dim * 2     # F self row tile, bf16
                + 2 * tm * out_dim * 4     # output tile, f32
                + tm * out_dim * 4)        # accumulator scratch, f32
        return vmem <= budget_bytes

    tm_cands = [t for t in (2048, 1024, 512, 256, 128) if n % t == 0]
    if not tm_cands:
        # Unaligned toy graphs: single resident block. Correct, but will exceed VMEM for
        # large unaligned N — pad N to a multiple of 128 in that case.
        return n, n
    tk_cands = sorted({t for t in (n, 16384, 8192, 4096, 2048, 1024, 512, 256, 128)
                       if t <= n and n % t == 0}, reverse=True)
    for min_rows in (4, 2, 1):
        for tm in tm_cands:
            if n // tm < min_rows:
                continue
            for tk in tk_cands:
                if fits(tm, tk):
                    return tm, tk
    return tm_cands[-1], tk_cands[-1]


# -------------------------- One-time preparation (hoisted out of the forward) ---------------

def prepare_adjacency(adj):
    """Cast the dense 0/1 adjacency to int8 ONCE at graph construction.
    (A per-call cast would read 4 B + write 1 B per element before the kernel even reads
    it — several times the kernel's own adjacency traffic.) Exact only for unweighted
    0/1 edges; weighted graphs must keep a float adjacency."""
    return adj.astype(jnp.int8)


def prepare_projection(proj, in_dim):
    """Split + cast the RandomProjection matrix once (call at init, not per forward).
    Returns (sel_out, sel_in, p_cross, p_lin, p_const)."""
    d = in_dim
    d2 = d * d
    assert proj.shape[0] == d2 + d + 1, "projection rows must match the degree-2 expansion"
    p_cross = proj[:d2].astype(jnp.bfloat16)                 # (d*d, out_dim)
    p_lin = proj[d2:d2 + d].astype(jnp.bfloat16)             # (d,   out_dim)
    p_const = proj[d2 + d:].astype(jnp.float32)              # (1,   out_dim), f32 broadcast
    cols = jnp.arange(d2)[None, :]
    rows = jnp.arange(d)[:, None]
    sel_out = (cols // d == rows).astype(jnp.bfloat16)       # rep[:, i*d+j] = x_i
    sel_in = (cols % d == rows).astype(jnp.bfloat16)         # til[:, i*d+j] = x_j
    return sel_out, sel_in, p_cross, p_lin, p_const


# -------------------------- Wrapper --------------------------

def wls_kernel_layer(features, adj_i8, params, *, scale=1.0, poly_c=1.0):
    """features: [N, in_dim] f32; adj_i8: [N, N] int8 (A[i,j]=1 iff edge j->i), prepared
    once via prepare_adjacency; params: output of prepare_projection."""
    sel_out, sel_in, p_cross, p_lin, p_const = params
    n, in_dim = features.shape
    d2 = in_dim * in_dim
    out_dim = p_cross.shape[1]
    # out_dim multiple of 128 keeps the output lane-dense; a multiple of 256 would also
    # fill the full MXU N-width on v6e/v7x if the hyperparameter is tunable.
    assert out_dim % 128 == 0, "keep the output lane-dense (out_dim multiple of 128)"
    assert adj_i8.shape == (n, n) and adj_i8.dtype == jnp.int8

    vmem_limit = _vmem_limit_bytes()
    tm, tk = _pick_tiles(n, out_dim, int(vmem_limit * 0.85))   # headroom under the limit

    # ---- pass 1: F = phi(x * scale) @ P, computed once per node, emitted as bf16 ----
    f_bf16 = pl.pallas_call(
        functools.partial(_expand_project_kernel, scale=scale, poly_c=poly_c),
        out_shape=jax.ShapeDtypeStruct((n, out_dim), jnp.bfloat16),
        grid=(n // tm,),
        in_specs=[
            pl.BlockSpec((tm, in_dim), lambda i: (i, 0)),        # node-feature row tiles
            pl.BlockSpec((in_dim, d2), lambda i: (0, 0)),        # selector S_out, resident
            pl.BlockSpec((in_dim, d2), lambda i: (0, 0)),        # selector S_in,  resident
            pl.BlockSpec((d2, out_dim), lambda i: (0, 0)),       # P_cross, resident
            pl.BlockSpec((in_dim, out_dim), lambda i: (0, 0)),   # P_lin,   resident
            pl.BlockSpec((1, out_dim), lambda i: (0, 0)),        # P_const row, resident
        ],
        out_specs=pl.BlockSpec((tm, out_dim), lambda i: (i, 0)),
        compiler_params=pltpu.CompilerParams(
            dimension_semantics=("parallel",),
            vmem_limit_bytes=vmem_limit),
    )(features, sel_out, sel_in, p_cross, p_lin, p_const)

    # ---- pass 2: out = A @ F + F; int8 adjacency streamed as (tm, tk) blocks,
    #      contraction axis accumulated in f32 scratch (init/finalize via pl.when) ----
    out = pl.pallas_call(
        _aggregate_kernel,
        out_shape=jax.ShapeDtypeStruct((n, out_dim), jnp.float32),
        grid=(n // tm, n // tk),
        in_specs=[
            pl.BlockSpec((tm, tk), lambda i, k: (i, k)),         # adjacency (int8) stream
            pl.BlockSpec((tk, out_dim), lambda i, k: (k, 0)),    # F contraction block (bf16)
            pl.BlockSpec((tm, out_dim), lambda i, k: (i, 0)),    # F self row tile (bf16)
        ],
        out_specs=pl.BlockSpec((tm, out_dim), lambda i, k: (i, 0)),
        scratch_shapes=[pltpu.VMEM((tm, out_dim), jnp.float32)],
        compiler_params=pltpu.CompilerParams(
            dimension_semantics=("parallel", "arbitrary"),
            vmem_limit_bytes=vmem_limit),
    )(adj_i8, f_bf16, f_bf16)
    return out


# -------------------------- Parameter init & pure-JAX reference --------------------------

def init_projection(key, expansion_dim, out_dim, binary=False):
    """RandomProjection: columns are random unit vectors (gaussian or binary)."""
    if binary:
        p = jnp.where(jax.random.bernoulli(key, 0.5, (expansion_dim, out_dim)), 1.0, -1.0)
    else:
        p = jax.random.normal(key, (expansion_dim, out_dim), jnp.float32)
    return (p / jnp.linalg.norm(p, axis=0, keepdims=True)).astype(jnp.float32)


def reference(features, adj, proj, *, scale, poly_c):
    """Literal module order: expand -> aggregate -> (h + expanded) -> project."""
    x = features * scale
    n, d = x.shape
    cross = (x[:, :, None] * x[:, None, :]).reshape(n, d * d)
    e = jnp.concatenate(
        [cross, jnp.sqrt(2.0 * poly_c) * x, jnp.full((n, 1), poly_c, jnp.float32)], axis=-1)
    h = adj @ e              # graph.update_all(copy_src, sum)
    comb = h + e             # cat_scale == 0.0 default combine
    return comb @ proj       # RandomProjection reduction


if __name__ == "__main__":
    # Small-but-lane-dense shapes consistent with the module.
    n_nodes = 1024
    in_dim = 16
    out_dim = 128
    scale = 0.5
    poly_c = 1.0

    key = jax.random.PRNGKey(0)
    kf, kp = jax.random.split(key)
    features = jax.random.normal(kf, (n_nodes, in_dim), jnp.float32)

    # Deterministic undirected ring graph: node i connected to i-1 and i+1.
    idx = jnp.arange(n_nodes)
    adj = (jnp.zeros((n_nodes, n_nodes), jnp.float32)
           .at[idx, (idx + 1) % n_nodes].set(1.0)
           .at[idx, (idx - 1) % n_nodes].set(1.0))

    d_exp = in_dim * in_dim + in_dim + 1
    proj = init_projection(kp, d_exp, out_dim, binary=False)

    # One-time preparation (hoisted out of the forward pass / repeated layer calls).
    adj_i8 = prepare_adjacency(adj)
    params = prepare_projection(proj, in_dim)

    out = wls_kernel_layer(features, adj_i8, params, scale=scale, poly_c=poly_c)
    out = jax.block_until_ready(out)

    ref = reference(features, adj, proj, scale=scale, poly_c=poly_c)
    assert out.shape == (n_nodes, out_dim)
    # bf16 MXU operands / bf16 F storage with f32 accumulation -> small deviation vs f32 ref.
    max_err = float(jnp.max(jnp.abs(out - ref)))
    ref_mag = float(jnp.max(jnp.abs(ref))) + 1e-6
    assert max_err / ref_mag < 3e-2, (max_err, ref_mag)

    print("KERNEL_OK")
</pallas_src>

<mosaic_0001>
module attributes {stable_mosaic.version = 11 : i64} {
  func.func @_expand_project_kernel(%arg0: i32, %arg1: memref<256x16xf32, #tpu.memory_space<vmem>>, %arg2: memref<16x256xbf16, #tpu.memory_space<vmem>>, %arg3: memref<16x256xbf16, #tpu.memory_space<vmem>>, %arg4: memref<256x128xbf16, #tpu.memory_space<vmem>>, %arg5: memref<16x128xbf16, #tpu.memory_space<vmem>>, %arg6: memref<1x128xf32, #tpu.memory_space<vmem>>, %arg7: memref<256x128xbf16, #tpu.memory_space<vmem>>) attributes {dimension_semantics = [#tpu.dimension_semantics<parallel>], iteration_bounds = array<i64: 4>, scalar_prefetch = 0 : i64, scratch_operands = 0 : i64, tpu.core_type = #tpu.core_type<tc>, window_params = [{transform_indices = @transform_0, window_bounds = array<i64: 256, 16>}, {pipeline_mode = #tpu.pipeline_mode<synchronous>, transform_indices = @transform_1, window_bounds = array<i64: 16, 256>}, {pipeline_mode = #tpu.pipeline_mode<synchronous>, transform_indices = @transform_2, window_bounds = array<i64: 16, 256>}, {pipeline_mode = #tpu.pipeline_mode<synchronous>, transform_indices = @transform_3, window_bounds = array<i64: 256, 128>}, {pipeline_mode = #tpu.pipeline_mode<synchronous>, transform_indices = @transform_4, window_bounds = array<i64: 16, 128>}, {pipeline_mode = #tpu.pipeline_mode<synchronous>, transform_indices = @transform_5, window_bounds = array<i64: 1, 128>}, {transform_indices = @transform_6, window_bounds = array<i64: 256, 128>}]} {
    %c0 = arith.constant 0 : index
    %c0_0 = arith.constant 0 : index
    %0 = vector.load %arg1[%c0, %c0_0] : memref<256x16xf32, #tpu.memory_space<vmem>>, vector<256x16xf32>
    %cst = arith.constant 5.000000e-01 : f32
    %1 = vector.broadcast %cst : f32 to vector<256x16xf32>
    %2 = arith.mulf %0, %1 : vector<256x16xf32>
    %3 = arith.truncf %2 : vector<256x16xf32> to vector<256x16xbf16>
    %c0_1 = arith.constant 0 : index
    %c0_2 = arith.constant 0 : index
    %4 = vector.load %arg2[%c0_1, %c0_2] : memref<16x256xbf16, #tpu.memory_space<vmem>>, vector<16x256xbf16>
    %cst_3 = arith.constant dense<0.000000e+00> : vector<256x256xf32>
    %5 = tpu.matmul %3, %4, %cst_3 {dimension_numbers = #tpu.dot_dimension_numbers<[1], [0], [0], [1], [0, 0, 1, 1], [], []>} : vector<256x16xbf16>, vector<16x256xbf16>, vector<256x256xf32> -> vector<256x256xf32>
    %c0_4 = arith.constant 0 : index
    %c0_5 = arith.constant 0 : index
    %6 = vector.load %arg3[%c0_4, %c0_5] : memref<16x256xbf16, #tpu.memory_space<vmem>>, vector<16x256xbf16>
    %cst_6 = arith.constant dense<0.000000e+00> : vector<256x256xf32>
    %7 = tpu.matmul %3, %6, %cst_6 {dimension_numbers = #tpu.dot_dimension_numbers<[1], [0], [0], [1], [0, 0, 1, 1], [], []>} : vector<256x16xbf16>, vector<16x256xbf16>, vector<256x256xf32> -> vector<256x256xf32>
    %8 = arith.mulf %5, %7 : vector<256x256xf32>
    %9 = arith.truncf %8 : vector<256x256xf32> to vector<256x256xbf16>
    %c0_7 = arith.constant 0 : index
    %c0_8 = arith.constant 0 : index
    %10 = vector.load %arg4[%c0_7, %c0_8] : memref<256x128xbf16, #tpu.memory_space<vmem>>, vector<256x128xbf16>
    %cst_9 = arith.constant dense<0.000000e+00> : vector<256x128xf32>
    %11 = tpu.matmul %9, %10, %cst_9 {dimension_numbers = #tpu.dot_dimension_numbers<[1], [0], [0], [1], [0, 0, 1, 1], [], []>} : vector<256x256xbf16>, vector<256x128xbf16>, vector<256x128xf32> -> vector<256x128xf32>
    %cst_10 = arith.constant 1.41421354 : f32
    %12 = vector.broadcast %cst_10 : f32 to vector<256x16xf32>
    %13 = arith.mulf %2, %12 : vector<256x16xf32>
    %14 = arith.truncf %13 : vector<256x16xf32> to vector<256x16xbf16>
    %c0_11 = arith.constant 0 : index
    %c0_12 = arith.constant 0 : index
    %15 = vector.load %arg5[%c0_11, %c0_12] : memref<16x128xbf16, #tpu.memory_space<vmem>>, vector<16x128xbf16>
    %cst_13 = arith.constant dense<0.000000e+00> : vector<256x128xf32>
    %16 = tpu.matmul %14, %15, %cst_13 {dimension_numbers = #tpu.dot_dimension_numbers<[1], [0], [0], [1], [0, 0, 1, 1], [], []>} : vector<256x16xbf16>, vector<16x128xbf16>, vector<256x128xf32> -> vector<256x128xf32>
    %17 = arith.addf %11, %16 : vector<256x128xf32>
    %c0_14 = arith.constant 0 : index
    %c0_15 = arith.constant 0 : index
    %18 = vector.load %arg6[%c0_14, %c0_15] : memref<1x128xf32, #tpu.memory_space<vmem>>, vector<1x128xf32>
    %cst_16 = arith.constant 1.000000e+00 : f32
    %19 = vector.broadcast %cst_16 : f32 to vector<1x128xf32>
    %20 = arith.mulf %19, %18 : vector<1x128xf32>
    %21 = vector.broadcast %20 : vector<1x128xf32> to vector<256x128xf32>
    %22 = arith.addf %17, %21 : vector<256x128xf32>
    %23 = arith.truncf %22 : vector<256x128xf32> to vector<256x128xbf16>
    %c0_17 = arith.constant 0 : index
    %c0_18 = arith.constant 0 : index
    %24 = vector.load %arg7[%c0_17, %c0_18] : memref<256x128xbf16, #tpu.memory_space<vmem>>, vector<256x128xbf16>
    tpu.vector_store %arg7[%c0_17, %c0_18], %23 {strides = array<i32>} : memref<256x128xbf16, #tpu.memory_space<vmem>>, vector<256x128xbf16>,
    return
  }
  func.func @transform_0(%arg0: i32) -> (i32, i32) {
    %c0_i32 = arith.constant 0 : i32
    %c0_i32_0 = arith.constant 0 : i32
    return %arg0, %c0_i32 : i32, i32
  }
  func.func @transform_1(%arg0: i32) -> (i32, i32) {
    %c0_i32 = arith.constant 0 : i32
    %c0_i32_0 = arith.constant 0 : i32
    %c0_i32_1 = arith.constant 0 : i32
    return %c0_i32, %c0_i32_0 : i32, i32
  }
  func.func @transform_2(%arg0: i32) -> (i32, i32) {
    %c0_i32 = arith.constant 0 : i32
    %c0_i32_0 = arith.constant 0 : i32
    %c0_i32_1 = arith.constant 0 : i32
    return %c0_i32, %c0_i32_0 : i32, i32
  }
  func.func @transform_3(%arg0: i32) -> (i32, i32) {
    %c0_i32 = arith.constant 0 : i32
    %c0_i32_0 = arith.constant 0 : i32
    %c0_i32_1 = arith.constant 0 : i32
    return %c0_i32, %c0_i32_0 : i32, i32
  }
  func.func @transform_4(%arg0: i32) -> (i32, i32) {
    %c0_i32 = arith.constant 0 : i32
    %c0_i32_0 = arith.constant 0 : i32
    %c0_i32_1 = arith.constant 0 : i32
    return %c0_i32, %c0_i32_0 : i32, i32
  }
  func.func @transform_5(%arg0: i32) -> (i32, i32) {
    %c0_i32 = arith.constant 0 : i32
    %c0_i32_0 = arith.constant 0 : i32
    %c0_i32_1 = arith.constant 0 : i32
    return %c0_i32, %c0_i32_0 : i32, i32
  }
  func.func @transform_6(%arg0: i32) -> (i32, i32) {
    %c0_i32 = arith.constant 0 : i32
    %c0_i32_0 = arith.constant 0 : i32
    return %arg0, %c0_i32 : i32, i32
  }
}

</mosaic_0001>

<bundles_post_ra>
// kernel: tpu_custom_call.1
= control target key start
LH: loop header
LB: loop body
LE: loop exit
PB: predicated region body
PF: predicated region fallthrough
CT: control target
= control target key end

     0   :  { %11 = vsyncpa [#allocation3], 0  ;;  %s3089_s0 = inlined_call_operand.vmem [shape: f32[1024,16], index: 0, kind: input, shape index: {}]   ;;  %s3090_s1 = inlined_call_operand.vmem [shape: bf16[16,256], index: 1, kind: input, shape index: {}]   ;;  %s3091_s2 = inlined_call_operand.vmem [shape: bf16[16,256], index: 2, kind: input, shape index: {}]   ;;  %s3092_s3 = inlined_call_operand.vmem [shape: bf16[256,128], index: 3, kind: input, shape index: {}]   ;;  %s3093_s4 = inlined_call_operand.vmem [shape: bf16[16,128], index: 4, kind: input, shape index: {}]   ;;  %s3094_s5 = inlined_call_operand.vmem [shape: f32[1,128], index: 5, kind: input, shape index: {}]   ;;  %s3095_s6 = inlined_call_operand.hbm [shape: bf16[1024,128], index: 6, kind: output, shape index: {}]  }
   0x1   :  { %13 = vsyncpa [#allocation3 + $0x1], 0  ;;  %s2291_s21 = smov 0   ;;  %s2293_s22 = smov 0  }
   0x2   :  { %s2295_s23 = smov 0   ;;  %s2297_s24 = smov 0  }
   0x3 LB: > { %s2312_s25 = sadd.s32 4294967295, %s2250_s24   ;;  %s1718_s26 = sadd.s32 4294967294, %s2250_s24   ;;  %s2250_s24 = sphi %s2297_s24, %s3166_s24   ;;  %s2246_s23 = sphi %s2295_s23, %s3165_s23   ;;  %s2242_s22 = sphi %s2293_s22, %s3164_s22   ;;  %s2238_s21 = sphi %s2291_s21, %s3163_s21  }
   0x4   : > { %s2316_s27 = sadd.s32 1, %s2250_s24   ;;  %s157_s28 = sadd.s32 1, %s2246_s23 }
   0x5   : > { %s154_s29 = ssub.s32 %s2250_s24, %s2316_s27  ;;  %p167_p0 = scmp.ne.s32.totalorder %s2246_s23, %s2242_s22 }
   0x6   : > { %p155_p1 = scmp.eq.s32.totalorder %s154_s29, 0  ;;  %p168_p2 = scmp.eq.s32.totalorder %s2312_s25, 3 }
   0x7   : > { %p173_p3 = scmp.ne.s32.totalorder %s2242_s22, %s2238_s21  ;;  %p174_p4 = scmp.eq.s32.totalorder %s1718_s26, 3 }
   0x8   : > { %s2327_s30 = scalar_select %p155_p1, %s2246_s23, %s157_s28  }
   0x9   : > { %p2329_p5 = por %p168_p2, %p167_p0  ;;  %p2333_p6 = por %p174_p4, %p173_p3 }
   0xa   : > { %p1721_p7 = scmp.ge.s32.totalorder %s2250_s24, 1  ;;  %p216_p8 = scmp.lt.s32.totalorder %s2250_s24, 5 }
   0xc   : > { %p217_p9 = pnand %p1721_p7, %p216_p8 }
   0xe   : > { %220 = sbr.rel (%p217_p9) target bundleno = 703 (0x2bf), region = 44 }
  0x13   : > { %v2167_v0 = vld [vmem:[%s3090_s1 + $0x4] ss:$8 sps:$4 sm:$0xff]   ;;  %s1723_s11 = sshll.u32 %s2312_s25, 5  ;;  %v2169_v1 = vld [vmem:[%s3090_s1] ss:$8 sps:$4 sm:$0xff]   ;;  %v2252_v2 = vmov 0  }
  0x14   : > { %427 = vmatprep.mubr.bf16.mxu0 %v2252_v2  ;;  %p247_p10 = scmp.lt.s32.totalorder %s1723_s11, 127  ;;  %672 = vmatprep.mubr.bf16.mxu1 %v2252_v2  ;;  %v2170_v3 = vld [vmem:[%s3091_s2] ss:$8 sps:$4 sm:$0xff]   ;;  %v2172_v4 = vld [vmem:[%s3091_s2 + $0x4] ss:$8 sps:$4 sm:$0xff]   ;;  %vm346_vm0 = vcmask 130048  }
  0x15   : > { %409 = vmatprep.subr.bf16.mxu0 %v2167_v0  ;;  %2123 = vmatprep.subr.bf16.mxu1 %v2172_v4  ;;  %s1864_s16 = sshll.u32 %s2312_s25, 11  ;;  %s2253_s28 = smov [#allocation2]  }
  0x16   : > { %410 = vmatpush1.bf16.msra.mxu0 %v2169_v1  ;;  %s3168_s11 = smov (!%p247_p10, %s1723_s11), 127  ;;  %2124 = vmatpush1.bf16.msra.mxu1 %v2170_v3  ;;  %s3042_s20 = scalar_lea.hbm %s3095_s6, %s1864_s16 }
  0x17   : > { %614 = vmatprep.subr.bf16.mxu0 %v2172_v4  ;;  %s1724_s18 = sshll.u32 %s3168_s11, 3  ;;  %s243_s11 = sand.u32 1, %s2242_s22  }
  0x18   : > { %s2357_s26 = scalar_lea.vmem %s3089_s0, %s1724_s18  ;;  %s1722_s14 = sshll.u32 %s243_s11, 7 }
  0x19   : > { %v254_v5 = vld [vmem:[%s2357_s26] sm:$0xff]  ;;  %v255_v6 = vld [vmem:[%s2357_s26 + $0x8] sm:$0xff]  ;;  %v256_v7 = vld [vmem:[%s2357_s26 + $0x10] sm:$0xff]  ;;  %s2990_s15 = scalar_lea.vmem [#allocation2], %s1722_s14  ;;  %s2194_s29 = sshll.u32 %s2253_s28, 4  ;;  %s2195_s29 = int_to_ptr.vmem [resolvable:$false] %s2194_s29 }
  0x1a   : > { %v2362_v8 = vmul.f32 0.5, %v254_v5  ;;  %v2364_v9 = vmul.f32 0.5, %v255_v6  ;;  %v257_v10 = vld [vmem:[%s2357_s26 + $0x18] sm:$0xff]  ;;  %v288_v11 = vmul.f32 0.5, %v256_v7  ;;  %v262_v13 = vld [vmem:[%s2357_s26 + $0x40] sm:$0xff]  ;;  %v263_v16 = vld [vmem:[%s2357_s26 + $0x48] sm:$0xff] }
  0x1b   : > { %v289_v12 = vmul.f32 0.5, %v257_v10  ;;  %v2377_v18 = vmul.f32 0.5, %v262_v13  ;;  %v2381_v19 = vmul.f32 0.5, %v263_v16  ;;  %v264_v21 = vld [vmem:[%s2357_s26 + $0x50] sm:$0xff]  ;;  %v265_v22 = vld [vmem:[%s2357_s26 + $0x58] sm:$0xff]  ;;  %v258_v25 = vld [vmem:[%s2357_s26 + $0x20] sm:$0xff] }
  0x1c   : > { %v2370_v14 = vpack.c.bf16 %v2364_v9, %v2362_v8  ;;  %v2372_v15 = vmul.f32 1.4142135, %v288_v11  ;;  %v259_v26 = vld [vmem:[%s2357_s26 + $0x28] sm:$0xff]  ;;  %v2395_v27 = vmul.f32 0.5, %v264_v21  ;;  %v2397_v28 = vmul.f32 0.5, %v265_v22  ;;  %v266_v29 = vld [vmem:[%s2357_s26 + $0x60] sm:$0xff] }
  0x1d   : > { %v2375_v17 = vmul.f32 1.4142135, %v289_v12  ;;  %v322_v23 = vpack.c.bf16 %v2381_v19, %v2377_v18  ;;  %v2390_v24 = vpack.c.bf16 %v289_v12, %v288_v11  ;;  %v267_v30 = vld [vmem:[%s2357_s26 + $0x68] sm:$0xff]  ;;  %v2402_v31 = vmul.f32 0.5, %v258_v25  ;;  %v260_v36 = vld [vmem:[%s2357_s26 + $0x30] sm:$0xff]  ;;  %v261_v37 = vld [vmem:[%s2357_s26 + $0x38] sm:$0xff] }
  0x1e   : > { %1727 = vmatmul.mubr.msk.bf16.vlgmr.msra.gmra.mxu0 %vm346_vm0, %v2370_v14  ;;  %v2404_v32 = vmul.f32 0.5, %v259_v26  ;;  %v323_v33 = vpack.c.bf16 %v2397_v28, %v2395_v27  ;;  %v2410_v34 = vmul.f32 0.5, %v266_v29  ;;  %v2412_v35 = vmul.f32 0.5, %v267_v30  ;;  %v268_v42 = vld [vmem:[%s2357_s26 + $0x70] sm:$0xff]  ;;  %v269_v43 = vld [vmem:[%s2357_s26 + $0x78] sm:$0xff]  ;;  %v270_v48 = vld [vmem:[%s2357_s26 + $0x80] sm:$0xff] }
  0x1f   : > { %615 = vmatpush1.bf16.msra.mxu0 %v2170_v3  ;;  %437 = vmatprep.mubr.bf16.mxu0 %v2252_v2  ;;  %v954_v20 = vpack.c.bf16 %v2375_v17, %v2372_v15  ;;  %v2425_v39 = vmul.f32 0.5, %v260_v36  ;;  %v2427_v40 = vmul.f32 0.5, %v261_v37  ;;  %v2439_v45 = vmul.f32 0.5, %v268_v42  ;;  %v271_v49 = vld [vmem:[%s2357_s26 + $0x88] sm:$0xff]  ;;  %v272_v53 = vld [vmem:[%s2357_s26 + $0x90] sm:$0xff]  ;;  %v273_v54 = vld [vmem:[%s2357_s26 + $0x98] sm:$0xff] }
  0x20   : > { %1749 = vmatmul.mubr.msk.bf16.vlgmr.msra.gmra.mxu1 %vm346_vm0, %v322_v23  ;;  %v2419_v38 = vpack.c.bf16 %v2404_v32, %v2402_v31  ;;  %v324_v41 = vpack.c.bf16 %v2412_v35, %v2410_v34  ;;  %v2441_v46 = vmul.f32 0.5, %v269_v43  ;;  %v2452_v50 = vmul.f32 0.5, %v270_v48  ;;  %v274_v58 = vld [vmem:[%s2357_s26 + $0xa0] sm:$0xff]  ;;  %v275_v59 = vld [vmem:[%s2357_s26 + $0xa8] sm:$0xff]  ;;  %v276_v63 = vld [vmem:[%s2357_s26 + $0xb0] sm:$0xff]  ;;  %s1656_s17 = sshll.u32 %s2990_s15, 4  ;;  %s3044_s17 = int_to_ptr.vmem [resolvable:$true] %s1656_s17 }
  0x21   : > { %682 = vmatprep.mubr.bf16.mxu1 %v2252_v2  ;;  %v2436_v44 = vpack.c.bf16 %v2427_v40, %v2425_v39  ;;  %v2454_v51 = vmul.f32 0.5, %v271_v49  ;;  %v2464_v55 = vmul.f32 0.5, %v272_v53  ;;  %v2466_v56 = vmul.f32 0.5, %v273_v54  ;;  %v277_v0 = vld [vmem:[%s2357_s26 + $0xb8] sm:$0xff]  ;;  %v278_v5 = vld [vmem:[%s2357_s26 + $0xc0] sm:$0xff]  ;;  %v279_v6 = vld [vmem:[%s2357_s26 + $0xc8] sm:$0xff]  ;;  %p2197_p0 = scmp.lt.s32.totalorder %s3044_s17, %s2195_s29 }
  0x22   : > { %v325_v47 = vpack.c.bf16 %v2441_v46, %v2439_v45  ;;  %v2476_v60 = vmul.f32 0.5, %v274_v58  ;;  %v2478_v61 = vmul.f32 0.5, %v275_v59  ;;  %v2488_v1 = vmul.f32 0.5, %v276_v63  ;;  %v280_v12 = vld [vmem:[%s2357_s26 + $0xd0] sm:$0xff]  ;;  %v281_v13 = vld [vmem:[%s2357_s26 + $0xd8] sm:$0xff]  ;;  %v283_v25 = vld [vmem:[%s2357_s26 + $0xe8] sm:$0xff] }
  0x23   : > { %v326_v52 = vpack.c.bf16 %v2454_v51, %v2452_v50  ;;  %v327_v57 = vpack.c.bf16 %v2466_v56, %v2464_v55  ;;  %v2490_v3 = vmul.f32 0.5, %v277_v0  ;;  %v2500_v7 = vmul.f32 0.5, %v278_v5  ;;  %v285_v36 = vld [vmem:[%s2357_s26 + $0xf8] sm:$0xff]  ;;  %v2175_v48 = vld [vmem:[%s3092_s3 + $0x70] sm:$0xff]   ;;  %v2178_v53 = vld [vmem:[%s3092_s3 + $0x28] sm:$0xff]   ;;  %s2190_s25 = scalar_lea.vmem %s3044_s17, 2048 }
  0x24   : > { %v328_v62 = vpack.c.bf16 %v2478_v61, %v2476_v60  ;;  %v2502_v10 = vmul.f32 0.5, %v279_v6  ;;  %v2512_v16 = vmul.f32 0.5, %v280_v12  ;;  %v2514_v21 = vmul.f32 0.5, %v281_v13  ;;  %v2173_v43 = vld [vmem:[%s3092_s3 + $0x78] sm:$0xff]   ;;  %v2176_v49 = vld [vmem:[%s3092_s3 + $0x30] sm:$0xff]   ;;  %v2180_v54 = vld [vmem:[%s3092_s3 + $0x20] sm:$0xff]   ;;  %p2191_p11 = scmp.ne.s32.totalorder %s3044_s17, %s2190_s25 }
  0x25   : > { %v329_v4 = vpack.c.bf16 %v2490_v3, %v2488_v1  ;;  %v2526_v29 = vmul.f32 0.5, %v283_v25  ;;  %1977 = vmatprep.subr.bf16.mxu1 %v2173_v43  ;;  %v2186_v58 = vld [vmem:[%s3092_s3 + $0x8] sm:$0xff]   ;;  %v2188_v63 = vld [vmem:[%s3092_s3] sm:$0xff]   ;;  %v922_v25 = vmul.f32 1.4142135, %v2364_v9  ;;  %s2196_s9 = scalar_lea.vmem %s2195_s29, 4096 }
  0x26   : > { %1728 = vmatmul.mubr.msk.bf16.gmra.mxu0 %vm346_vm0, %v2390_v24  ;;  %v330_v11 = vpack.c.bf16 %v2502_v10, %v2500_v7  ;;  %v331_v22 = vpack.c.bf16 %v2514_v21, %v2512_v16  ;;  %v925_v15 = vmul.f32 1.4142135, %v2402_v31  ;;  %v926_v17 = vmul.f32 1.4142135, %v2404_v32  ;;  %p2192_p12 = pnand %p2191_p11, %p2329_p5  ;;  %p2198_p1 = scmp.lt.s32.totalorder %s2196_s9, %s2190_s25 }
  0x27   : > { %447 = vmatprep.mubr.bf16.mxu0 %v2252_v2 }
  0x28   : > { %1750 = vmatmul.mubr.msk.bf16.gmra.mxu1 %vm346_vm0, %v323_v33  ;;  %p2193_p13 = pneg %p2192_p12  ;;  %p2199_p2 = por %p2198_p1, %p2197_p0 }
  0x29   : > { %692 = vmatprep.mubr.bf16.mxu1 %v2252_v2 }
  0x2a   : > { %p2200_p3 = pnand %p2199_p2, %p2193_p13 }
  0x2e   : > { %1729 = vmatmul.mubr.msk.bf16.gmra.mxu0 %vm346_vm0, %v2419_v38 }
  0x2f   : > { %457 = vmatprep.mubr.bf16.mxu0 %v2252_v2 }
  0x30   : > { %1751 = vmatmul.mubr.msk.bf16.gmra.mxu1 %vm346_vm0, %v324_v41 }
  0x31   : > { %702 = vmatprep.mubr.bf16.mxu1 %v2252_v2 }
  0x36   : > { %1730 = vmatmul.mubr.msk.bf16.gmra.mxu0 %vm346_vm0, %v2436_v44 }
  0x37   : > { %467 = vmatprep.mubr.bf16.mxu0 %v2252_v2 }
  0x38   : > { %1752 = vmatmul.mubr.msk.bf16.gmra.mxu1 %vm346_vm0, %v325_v47 }
  0x39   : > { %712 = vmatprep.mubr.bf16.mxu1 %v2252_v2 }
  0x3e   : > { %1731 = vmatmul.mubr.msk.bf16.gmra.mxu0 %vm346_vm0, %v322_v23  ;;  %v282_v23 = vld [vmem:[%s2357_s26 + $0xe0] sm:$0xff] }
  0x3f   : > { %477 = vmatprep.mubr.bf16.mxu0 %v2252_v2  ;;  %v2524_v26 = vmul.f32 0.5, %v282_v23  ;;  %v921_v23 = vmul.f32 1.4142135, %v2362_v8 }
  0x40   : > { %1753 = vmatmul.mubr.msk.bf16.gmra.mxu1 %vm346_vm0, %v326_v52 }
  0x41   : > { %722 = vmatprep.mubr.bf16.mxu1 %v2252_v2  ;;  %v332_v30 = vpack.c.bf16 %v2526_v29, %v2524_v26 }
  0x46   : > { %1732 = vmatmul.mubr.msk.bf16.gmra.mxu0 %vm346_vm0, %v323_v33  ;;  %v284_v33 = vld [vmem:[%s2357_s26 + $0xf0] sm:$0xff]  ;;  %s3049_s26 = scalar_lea.sflag [#allocation3], %s243_s11 }
  0x47   : > { %487 = vmatprep.mubr.bf16.mxu0 %v2252_v2  ;;  %v2536_v37 = vmul.f32 0.5, %v284_v33 }
  0x48   : > { %1754 = vmatmul.mubr.msk.bf16.gmra.mxu1 %vm346_vm0, %v327_v57 }
  0x49   : > { %732 = vmatprep.mubr.bf16.mxu1 %v2252_v2 }
  0x4e   : > { %1733 = vmatmul.mubr.msk.bf16.gmra.mxu0 %vm346_vm0, %v324_v41  ;;  %v2538_v41 = vmul.f32 0.5, %v285_v36  ;;  %v953_v36 = vpack.c.bf16 %v922_v25, %v921_v23 }
  0x4f   : > { %497 = vmatprep.mubr.bf16.mxu0 %v2252_v2 }
  0x50   : > { %1755 = vmatmul.mubr.msk.bf16.gmra.mxu1 %vm346_vm0, %v328_v62  ;;  %v333_v42 = vpack.c.bf16 %v2538_v41, %v2536_v37 }
  0x51   : > { %742 = vmatprep.mubr.bf16.mxu1 %v2252_v2 }
  0x56   : > { %1734 = vmatmul.mubr.msk.bf16.gmra.mxu0 %vm346_vm0, %v325_v47  ;;  %v2174_v47 = vld [vmem:[%s3092_s3 + $0x38] sm:$0xff]  }
  0x57   : > { %507 = vmatprep.mubr.bf16.mxu0 %v2252_v2  ;;  %1978 = vmatpush3.bf16.msra.mxu1 %v2174_v47 }
  0x58   : > { %1756 = vmatmul.mubr.msk.bf16.gmra.mxu1 %vm346_vm0, %v329_v4  ;;  %1979 = vmatprep.subr.bf16.mxu1 %v2175_v48 }
  0x59   : > { %752 = vmatprep.mubr.bf16.mxu1 %v2252_v2 }
  0x5b   : > { %1980 = vmatpush3.bf16.msra.mxu1 %v2176_v49 }
  0x5e   : > { %1735 = vmatmul.mubr.msk.bf16.gmra.mxu0 %vm346_vm0, %v326_v52  ;;  %v2177_v52 = vld [vmem:[%s3092_s3 + $0x68] sm:$0xff]  }
  0x5f   : > { %517 = vmatprep.mubr.bf16.mxu0 %v2252_v2  ;;  %1981 = vmatprep.subr.bf16.mxu1 %v2177_v52 }
  0x60   : > { %1757 = vmatmul.mubr.msk.bf16.gmra.mxu1 %vm346_vm0, %v330_v11 }
  0x61   : > { %762 = vmatprep.mubr.bf16.mxu1 %v2252_v2  ;;  %1982 = vmatpush3.bf16.msra.mxu1 %v2178_v53 }
  0x66   : > { %1736 = vmatmul.mubr.msk.bf16.gmra.mxu0 %vm346_vm0, %v327_v57  ;;  %v2184_v57 = vld [vmem:[%s3092_s3 + $0x10] sm:$0xff]  }
  0x67   : > { %527 = vmatprep.mubr.bf16.mxu0 %v2252_v2 }
  0x68   : > { %1758 = vmatmul.mubr.msk.bf16.gmra.mxu1 %vm346_vm0, %v331_v22 }
  0x69   : > { %772 = vmatprep.mubr.bf16.mxu1 %v2252_v2 }
  0x6e   : > { %1737 = vmatmul.mubr.msk.bf16.gmra.mxu0 %vm346_vm0, %v328_v62  ;;  %v2187_v62 = vld [vmem:[%s3092_s3 + $0x40] sm:$0xff]  }
  0x6f   : > { %537 = vmatprep.mubr.bf16.mxu0 %v2252_v2 }
  0x70   : > { %1759 = vmatmul.mubr.msk.bf16.gmra.mxu1 %vm346_vm0, %v332_v30 }
  0x71   : > { %782 = vmatprep.mubr.bf16.mxu1 %v2252_v2 }
  0x76   : > { %1738 = vmatmul.mubr.msk.bf16.gmra.mxu0 %vm346_vm0, %v329_v4 }
  0x77   : > { %547 = vmatprep.mubr.bf16.mxu0 %v2252_v2 }
  0x78   : > { %1760 = vmatmul.mubr.msk.bf16.gmra.mxu1 %vm346_vm0, %v333_v42 }
  0x7e   : > { %1739 = vmatmul.mubr.msk.bf16.gmra.mxu0 %vm346_vm0, %v330_v11 }
  0x7f   : > { %557 = vmatprep.mubr.bf16.mxu0 %v2252_v2 }
  0x86   : > { %1740 = vmatmul.mubr.msk.bf16.gmra.mxu0 %vm346_vm0, %v331_v22  ;;  %v2189_v22 = vld [vmem:[%s3093_s4] sm:$0xff]  }
  0x87   : > { %567 = vmatprep.mubr.bf16.mxu0 %v2252_v2  ;;  %2089 = vmatprep.subr.bf16.mxu0 %v2189_v22 }
  0x8e   : > { %1741 = vmatmul.mubr.msk.bf16.gmra.mxu0 %vm346_vm0, %v332_v30 }
  0x8f   : > { %577 = vmatprep.mubr.bf16.mxu0 %v2252_v2 }
  0x96   : > { %1742 = vmatmul.mubr.msk.bf16.gmra.mxu0 %vm346_vm0, %v333_v42 }
  0x97   : > { %632 = vmatprep.mubr.bf16.mxu0 %v2252_v2 }
  0x9e   : > { %1745 = vmatmul.mubr.msk.bf16.vlgmr.msra.gmra.mxu0 %vm346_vm0, %v2370_v14  ;;  %v2179_v14 = vld [vmem:[%s3092_s3 + $0x60] sm:$0xff]  }
  0x9f   : > { %642 = vmatprep.mubr.bf16.mxu0 %v2252_v2  ;;  %1983 = vmatprep.subr.bf16.mxu1 %v2179_v14 }
  0xa0   : > { %1984 = vmatpush3.bf16.msra.mxu1 %v2180_v54  ;;  %2090 = vmatpush3.bf16.msra.mxu0 %v2189_v22 }
  0xa6   : > { %1746 = vmatmul.mubr.msk.bf16.gmra.mxu0 %vm346_vm0, %v2390_v24  ;;  %v2181_v24 = vld [vmem:[%s3092_s3 + $0x58] sm:$0xff]  }
  0xa7   : > { %652 = vmatprep.mubr.bf16.mxu0 %v2252_v2  ;;  %1985 = vmatprep.subr.bf16.mxu1 %v2181_v24 }
  0xae   : > { %1747 = vmatmul.mubr.msk.bf16.gmra.mxu0 %vm346_vm0, %v2419_v38  ;;  %v2183_v38 = vld [vmem:[%s3092_s3 + $0x50] sm:$0xff]  }
  0xaf   : > { %662 = vmatprep.mubr.bf16.mxu0 %v2252_v2  ;;  %v2182_v2 = vld [vmem:[%s3092_s3 + $0x18] sm:$0xff]  }
  0xb0   : > { %1986 = vmatpush3.bf16.msra.mxu1 %v2182_v2 }
  0xb1   : > { %1987 = vmatprep.subr.bf16.mxu1 %v2183_v38 }
  0xb4   : > { %1988 = vmatpush3.bf16.msra.mxu1 %v2184_v57 }
  0xb6   : > { %1748 = vmatmul.mubr.msk.bf16.gmra.mxu0 %vm346_vm0, %v2436_v44  ;;  %v2185_v44 = vld [vmem:[%s3092_s3 + $0x48] sm:$0xff]  }
  0xb7   : > { %1989 = vmatprep.subr.bf16.mxu1 %v2185_v44  ;;  %2091 = vmatprep.mubr.msk.bf16.mxu0 %vm346_vm0, %v953_v36  ;;  %v927_v44 = vmul.f32 1.4142135, %v2425_v39 }
  0xb8   : > { %1990 = vmatpush3.bf16.msra.mxu1 %v2186_v58  ;;  %v928_v58 = vmul.f32 1.4142135, %v2427_v40 }
  0xb9   : > { %1991 = vmatprep.subr.bf16.mxu1 %v2187_v62  ;;  %v955_v62 = vpack.c.bf16 %v926_v17, %v925_v15 }
  0xba   : > { %v956_v23 = vpack.c.bf16 %v928_v58, %v927_v44 }
  0xbc   : > { %1992 = vmatpush3.bf16.msra.mxu1 %v2188_v63 }
  0xbe   : > { %2092 = vmatmul.mubr.msk.bf16.vlgmr.msra.gmra.mxu0 %vm346_vm0, %v954_v20 }
  0xbf   : > { %2095 = vmatprep.mubr.msk.bf16.mxu0 %vm346_vm0, %v955_v62 }
  0xc6   : > { %2096 = vmatmul.mubr.msk.bf16.gmra.mxu0 %vm346_vm0, %v956_v23 }
  0xde   : > { %v2607_v59 = vpop.f32.mrf.mxu0 }
  0xe0   : > { %v2615_v0 = vpop.f32.mrf.mxu0  ;;  %v674_v5 = vpop.f32.mrf.mxu1 }
  0xe2   : > { %v2617_v4 = vpop.f32.mrf.mxu0  ;;  %v676_v11 = vpop.f32.mrf.mxu1 }
  0xe4   : > { %v2619_v6 = vpop.f32.mrf.mxu0  ;;  %v678_v13 = vpop.f32.mrf.mxu1 }
  0xe6   : > { %v2621_v12 = vpop.f32.mrf.mxu0  ;;  %v680_v33 = vpop.f32.mrf.mxu1 }
  0xe8   : > { %v2628_v30 = vpop.f32.mrf.mxu0  ;;  %v684_v43 = vpop.f32.mrf.mxu1 }
  0xea   : > { %v2630_v42 = vpop.f32.mrf.mxu0  ;;  %v686_v48 = vpop.f32.mrf.mxu1 }
  0xec   : > { %v2633_v47 = vpop.f32.mrf.mxu0  ;;  %v688_v9 = vpop.f32.mrf.mxu1 }
  0xee   : > { %v2639_v8 = vpop.f32.mrf.mxu0  ;;  %v690_v52 = vpop.f32.mrf.mxu1 }
  0xef   : > { %3107 = vst [vmem:[#allocation5_spill] sm:$0xff] %v2639_v8 }
  0xf0   : > { %v2641_v49 = vpop.f32.mrf.mxu0  ;;  %v694_v14 = vpop.f32.mrf.mxu1 }
  0xf1   : > { %3108 = vst [vmem:[#allocation6_spill] sm:$0xff] %v2641_v49 }
  0xf2   : > { %v2643_v53 = vpop.f32.mrf.mxu0  ;;  %v2647_v24 = vpop.f32.mrf.mxu1 }
  0xf4   : > { %v2645_v54 = vpop.f32.mrf.mxu0  ;;  %v698_v38 = vpop.f32.mrf.mxu1 }
  0xf5   : > { %3109 = vst [vmem:[#allocation7_spill] sm:$0xff] %v2645_v54 }
  0xf6   : > { %v2649_v2 = vpop.f32.mrf.mxu0  ;;  %v700_v57 = vpop.f32.mrf.mxu1 }
  0xf7   : > { %3110 = vst [vmem:[#allocation8_spill] sm:$0xff] %v2649_v2 }
  0xf8   : > { %v2653_v20 = vpop.f32.mrf.mxu0  ;;  %v2659_v22 = vpop.f32.mrf.mxu1 }
  0xf9   : > { %3111 = vst [vmem:[#allocation9_spill] sm:$0xff] %v2653_v20 }
  0xfa   : > { %v2657_v63 = vpop.f32.mrf.mxu0  ;;  %v2664_v31 = vpop.f32.mrf.mxu1 }
  0xfb   : > { %3112 = vst [vmem:[#allocation10_spill] sm:$0xff] %v2657_v63 }
  0xfc   : > { %v2662_v25 = vpop.f32.mrf.mxu0  ;;  %v708_v36 = vpop.f32.mrf.mxu1 }
  0xfd   : > { %3113 = vst [vmem:[#allocation11_spill] sm:$0xff] %v2662_v25 }
  0xfe   : > { %v469_v32 = vpop.f32.mrf.mxu0  ;;  %v2667_v39 = vpop.f32.mrf.mxu1 }
  0xff   : > { %v2671_v17 = vmul.f32 %v674_v5, %v469_v32  ;;  %v929_v5 = vmul.f32 1.4142135, %v2377_v18 }
 0x100   : > { %v471_v2 = vpop.f32.mrf.mxu0  ;;  %v2669_v15 = vpop.f32.mrf.mxu1 }
 0x101   : > { %3114 = vst [vmem:[#allocation12_spill] sm:$0xff] %v2671_v17  ;;  %v2677_v62 = vmul.f32 %v676_v11, %v471_v2  ;;  %v931_v11 = vmul.f32 1.4142135, %v2395_v27  ;;  %v932_v2 = vmul.f32 1.4142135, %v2397_v28 }
 0x102   : > { %v473_v40 = vpop.f32.mrf.mxu0  ;;  %v2675_v58 = vpop.f32.mrf.mxu1 }
 0x103   : > { %v2673_v20 = vmul.f32 %v678_v13, %v473_v40  ;;  %v930_v13 = vmul.f32 1.4142135, %v2381_v19  ;;  %v958_v17 = vpack.c.bf16 %v932_v2, %v931_v11 }
 0x104   : > { %v475_v44 = vpop.f32.mrf.mxu0  ;;  %v2683_v8 = vpop.f32.mrf.mxu1 }
 0x105   : > { %3115 = vst [vmem:[#allocation13_spill] sm:$0xff] %v2673_v20  ;;  %v2681_v25 = vmul.f32 %v680_v33, %v475_v44  ;;  %v957_v23 = vpack.c.bf16 %v930_v13, %v929_v5 }
 0x106   : > { %v479_v63 = vpop.f32.mrf.mxu0  ;;  %v2689_v40 = vpop.f32.mrf.mxu1 }
 0x107   : > { %v2695_v20 = vmul.f32 %v684_v43, %v479_v63  ;;  %2099 = vmatprep.mubr.msk.bf16.mxu0 %vm346_vm0, %v957_v23 }
 0x108   : > { %v481_v32 = vpop.f32.mrf.mxu0  ;;  %v2693_v44 = vpop.f32.mrf.mxu1  ;;  %2100 = vmatmul.mubr.msk.bf16.gmra.mxu0 %vm346_vm0, %v958_v17 }
 0x109   : > { %3116 = vst [vmem:[#allocation14_spill] sm:$0xff] %v2695_v20  ;;  %v2703_v54 = vmul.f32 %v686_v48, %v481_v32 }
 0x10a   : > { %v483_v33 = vpop.f32.mrf.mxu0  ;;  %v2700_v19 = vpop.f32.mrf.mxu1 }
 0x10b   : > { %v2697_v49 = vmul.f32 %v688_v9, %v483_v33  ;;  %3118 = vst [vmem:[#allocation16_spill] sm:$0xff] %v2703_v54 }
 0x10c   : > { %v485_v18 = vpop.f32.mrf.mxu0  ;;  %v728_v13 = vpop.f32.mrf.mxu1 }
 0x10d   : > { %3117 = vst [vmem:[#allocation15_spill] sm:$0xff] %v2697_v49  ;;  %v2707_v28 = vmul.f32 %v690_v52, %v485_v18  ;;  %v935_v49 = vmul.f32 1.4142135, %v2439_v45 }
 0x10e   : > { %v489_v5 = vpop.f32.mrf.mxu0  ;;  %v2711_v63 = vpop.f32.mrf.mxu1 }
 0x10f   : > { %v2715_v2 = vmul.f32 %v694_v14, %v489_v5  ;;  %v933_v14 = vmul.f32 1.4142135, %v2410_v34 }
 0x110   : > { %v491_v9 = vpop.f32.mrf.mxu0  ;;  %v2713_v11 = vpop.f32.mrf.mxu1 }
 0x111   : > { %3119 = vst [vmem:[#allocation17_spill] sm:$0xff] %v2715_v2  ;;  %v2722_v52 = vmul.f32 %v2647_v24, %v491_v9  ;;  %v936_v24 = vmul.f32 1.4142135, %v2441_v46 }
 0x112   : > { %v493_v23 = vpop.f32.mrf.mxu0  ;;  %v2719_v32 = vpop.f32.mrf.mxu1 }
 0x113   : > { %v2717_v48 = vmul.f32 %v698_v38, %v493_v23  ;;  %v934_v38 = vmul.f32 1.4142135, %v2412_v35 }
 0x114   : > { %v495_v17 = vpop.f32.mrf.mxu0  ;;  %v738_v43 = vpop.f32.mrf.mxu1 }
 0x115   : > { %v2726_v18 = vmul.f32 %v700_v57, %v495_v17  ;;  %v959_v9 = vpack.c.bf16 %v934_v38, %v933_v14  ;;  %v960_v57 = vpack.c.bf16 %v936_v24, %v935_v49 }
 0x116   : > { %v499_v27 = vpop.f32.mrf.mxu0  ;;  %v740_v23 = vpop.f32.mrf.mxu1 }
 0x117   : > { %v2737_v17 = vmul.f32 %v2659_v22, %v499_v27  ;;  %2103 = vmatprep.mubr.msk.bf16.mxu0 %vm346_vm0, %v959_v9 }
 0x118   : > { %v501_v5 = vpop.f32.mrf.mxu0  ;;  %v2734_v33 = vpop.f32.mrf.mxu1  ;;  %2104 = vmatmul.mubr.msk.bf16.gmra.mxu0 %vm346_vm0, %v960_v57 }
 0x119   : > { %3120 = vst [vmem:[#allocation18_spill] sm:$0xff] %v2737_v17  ;;  %v2746_v45 = vmul.f32 %v2664_v31, %v501_v5  ;;  %v939_v17 = vmul.f32 1.4142135, %v2464_v55 }
 0x11a   : > { %v503_v54 = vpop.f32.mrf.mxu0  ;;  %v2742_v35 = vpop.f32.mrf.mxu1 }
 0x11b   : > { %v2739_v2 = vmul.f32 %v708_v36, %v503_v54 }
 0x11c   : > { %v505_v34 = vpop.f32.mrf.mxu0  ;;  %v748_v27 = vpop.f32.mrf.mxu1 }
 0x11d   : > { %3121 = vst [vmem:[#allocation19_spill] sm:$0xff] %v2739_v2  ;;  %v2751_v49 = vmul.f32 %v2667_v39, %v505_v34 }
 0x11e   : > { %v509_v22 = vpop.f32.mrf.mxu0  ;;  %v750_v14 = vpop.f32.mrf.mxu1 }
 0x11f   : > { %v2758_v9 = vmul.f32 %v2669_v15, %v509_v22  ;;  %v938_v22 = vmul.f32 1.4142135, %v2454_v51  ;;  %v941_v51 = vmul.f32 1.4142135, %v2476_v60 }
 0x120   : > { %v511_v36 = vpop.f32.mrf.mxu0  ;;  %v2755_v24 = vpop.f32.mrf.mxu1 }
 0x121   : > { %3122 = vst [vmem:[#allocation20_spill] sm:$0xff] %v2758_v9  ;;  %v2766_v39 = vmul.f32 %v2675_v58, %v511_v36  ;;  %v940_v58 = vmul.f32 1.4142135, %v2466_v56 }
 0x122   : > { %v513_v38 = vpop.f32.mrf.mxu0  ;;  %v2763_v57 = vpop.f32.mrf.mxu1 }
 0x123   : > { %v2761_v31 = vmul.f32 %v2683_v8, %v513_v38  ;;  %v937_v8 = vmul.f32 1.4142135, %v2452_v50  ;;  %v962_v9 = vpack.c.bf16 %v940_v58, %v939_v17 }
 0x124   : > { %v515_v5 = vpop.f32.mrf.mxu0  ;;  %v758_v20 = vpop.f32.mrf.mxu1 }
 0x125   : > { %v2771_v46 = vmul.f32 %v2689_v40, %v515_v5  ;;  %v961_v36 = vpack.c.bf16 %v938_v22, %v937_v8 }
 0x126   : > { %v519_v54 = vpop.f32.mrf.mxu0  ;;  %v760_v34 = vpop.f32.mrf.mxu1 }
 0x127   : > { %v2780_v40 = vmul.f32 %v2693_v44, %v519_v54  ;;  %2107 = vmatprep.mubr.msk.bf16.mxu0 %vm346_vm0, %v961_v36 }
 0x128   : > { %v521_v38 = vpop.f32.mrf.mxu0  ;;  %2108 = vmatmul.mubr.msk.bf16.gmra.mxu0 %vm346_vm0, %v962_v9  ;;  %v764_v17 = vpop.f32.mrf.mxu1 }
 0x129   : > { %v2787_v50 = vmul.f32 %v2700_v19, %v521_v38 }
 0x12a   : > { %v523_v2 = vpop.f32.mrf.mxu0  ;;  %v766_v54 = vpop.f32.mrf.mxu1 }
 0x12b   : > { %v2782_v5 = vmul.f32 %v728_v13, %v523_v2 }
 0x12c   : > { %v525_v15 = vpop.f32.mrf.mxu0  ;;  %v768_v58 = vpop.f32.mrf.mxu1 }
 0x12d   : > { %v2792_v55 = vmul.f32 %v2711_v63, %v525_v15 }
 0x12e   : > { %v529_v56 = vpop.f32.mrf.mxu0  ;;  %v770_v44 = vpop.f32.mrf.mxu1 }
 0x12f   : > { %v2797_v8 = vmul.f32 %v2713_v11, %v529_v56  ;;  %v942_v11 = vmul.f32 1.4142135, %v2478_v61  ;;  %v943_v56 = vmul.f32 1.4142135, %v2488_v1  ;;  %v945_v61 = vmul.f32 1.4142135, %v2500_v7 }
 0x130   : > { %v531_v13 = vpop.f32.mrf.mxu0 }
 0x131   : > { %v2802_v22 = vmul.f32 %v2719_v32, %v531_v13  ;;  %v944_v32 = vmul.f32 1.4142135, %v2490_v3  ;;  %v963_v13 = vpack.c.bf16 %v942_v11, %v941_v51  ;;  %v774_v51 = vpop.f32.mrf.mxu1 }
 0x132   : > { %v533_v2 = vpop.f32.mrf.mxu0 }
 0x133   : > { %v2799_v9 = vmul.f32 %v738_v43, %v533_v2  ;;  %v964_v63 = vpack.c.bf16 %v944_v32, %v943_v56  ;;  %2111 = vmatprep.mubr.msk.bf16.mxu0 %vm346_vm0, %v963_v13  ;;  %v776_v11 = vpop.f32.mrf.mxu1 }
 0x134   : > { %v535_v19 = vpop.f32.mrf.mxu0 }
 0x135   : > { %v2806_v15 = vmul.f32 %v740_v23, %v535_v19  ;;  %2112 = vmatmul.mubr.msk.bf16.gmra.mxu0 %vm346_vm0, %v964_v63  ;;  %v778_v13 = vpop.f32.mrf.mxu1 }
 0x136   : > { %v539_v38 = vpop.f32.mrf.mxu0 }
 0x137   : > { %v2815_v23 = vmul.f32 %v2734_v33, %v539_v38  ;;  %v780_v33 = vpop.f32.mrf.mxu1 }
 0x138   : > { %v541_v43 = vpop.f32.mrf.mxu0 }
 0x139   : > { %v2822_v60 = vmul.f32 %v2742_v35, %v541_v43 }
 0x13a   : > { %v543_v2 = vpop.f32.mrf.mxu0 }
 0x13b   : > { %v2817_v19 = vmul.f32 %v748_v27, %v543_v2 }
 0x13c   : > { %v545_v36 = vpop.f32.mrf.mxu0 }
 0x13d   : > { %v2826_v1 = vmul.f32 %v750_v14, %v545_v36 }
 0x13e   : > { %v549_v3 = vpop.f32.mrf.mxu0 }
 0x13f   : > { %v2831_v56 = vmul.f32 %v2755_v24, %v549_v3  ;;  %v946_v24 = vmul.f32 1.4142135, %v2502_v10  ;;  %v947_v3 = vmul.f32 1.4142135, %v2512_v16  ;;  %v949_v10 = vmul.f32 1.4142135, %v2524_v26 }
 0x140   : > { %v551_v27 = vpop.f32.mrf.mxu0 }
 0x141   : > { %v2836_v43 = vmul.f32 %v2763_v57, %v551_v27  ;;  %v948_v57 = vmul.f32 1.4142135, %v2514_v21  ;;  %v965_v27 = vpack.c.bf16 %v946_v24, %v945_v61  ;;  %v784_v61 = vpop.f32.mrf.mxu1 }
 0x142   : > { %v553_v38 = vpop.f32.mrf.mxu0 }
 0x143   : > { %v2833_v63 = vmul.f32 %v758_v20, %v553_v38  ;;  %v966_v14 = vpack.c.bf16 %v948_v57, %v947_v3  ;;  %2115 = vmatprep.mubr.msk.bf16.mxu0 %vm346_vm0, %v965_v27  ;;  %v786_v24 = vpop.f32.mrf.mxu1 }
 0x144   : > { %v555_v35 = vpop.f32.mrf.mxu0 }
 0x145   : > { %v2840_v36 = vmul.f32 %v760_v34, %v555_v35  ;;  %2116 = vmatmul.mubr.msk.bf16.gmra.mxu0 %vm346_vm0, %v966_v14  ;;  %v788_v27 = vpop.f32.mrf.mxu1 }
 0x146   : > { %v559_v32 = vpop.f32.mrf.mxu0 }
 0x147   : > { %v2848_v34 = vmul.f32 %v764_v17, %v559_v32  ;;  %v790_v17 = vpop.f32.mrf.mxu1 }
 0x148   : > { %v561_v20 = vpop.f32.mrf.mxu0 }
 0x149   : > { %v2854_v7 = vmul.f32 %v766_v54, %v561_v20 }
 0x14a   : > { %v563_v38 = vpop.f32.mrf.mxu0 }
 0x14b   : > { %v2850_v35 = vmul.f32 %v768_v58, %v563_v38 }
 0x14c   : > { %v565_v2 = vpop.f32.mrf.mxu0 }
 0x14d   : > { %v2858_v16 = vmul.f32 %v770_v44, %v565_v2 }
 0x14e   : > { %v569_v21 = vpop.f32.mrf.mxu0 }
 0x14f   : > { %v2862_v3 = vmul.f32 %v774_v51, %v569_v21  ;;  %v950_v51 = vmul.f32 1.4142135, %v2526_v29 }
 0x150   : > { %v571_v32 = vpop.f32.mrf.mxu0 }
 0x151   : > { %v2866_v54 = vmul.f32 %v776_v11, %v571_v32  ;;  %v952_v11 = vmul.f32 1.4142135, %v2538_v41  ;;  %v967_v32 = vpack.c.bf16 %v950_v51, %v949_v10 }
 0x152   : > { %v573_v58 = vpop.f32.mrf.mxu0 }
 0x153   : > { %v2864_v57 = vmul.f32 %v778_v13, %v573_v58  ;;  %v951_v13 = vmul.f32 1.4142135, %v2536_v37  ;;  %2119 = vmatprep.mubr.msk.bf16.mxu0 %vm346_vm0, %v967_v32 }
 0x154   : > { %v575_v14 = vpop.f32.mrf.mxu0 }
 0x155   : > { %v2870_v44 = vmul.f32 %v780_v33, %v575_v14  ;;  %v968_v20 = vpack.c.bf16 %v952_v11, %v951_v13 }
 0x156   : > { %v579_v2 = vpop.f32.mrf.mxu0 }
 0x157   : > { %v2878_v33 = vmul.f32 %v784_v61, %v579_v2  ;;  %2120 = vmatmul.mubr.msk.bf16.gmra.mxu0 %vm346_vm0, %v968_v20 }
 0x158   : > { %v581_v21 = vpop.f32.mrf.mxu0 }
 0x159   : > { %v2884_v26 = vmul.f32 %v786_v24, %v581_v21 }
 0x15a   : > { %v583_v58 = vpop.f32.mrf.mxu0 }
 0x15b   : > { %v2880_v14 = vmul.f32 %v788_v27, %v583_v58 }
 0x15c   : > { %v585_v38 = vpop.f32.mrf.mxu0 }
 0x15d   : > { %v2888_v37 = vmul.f32 %v790_v17, %v585_v38 }
 0x15e   : > { %v634_v41 = vpop.f32.mrf.mxu0 }
 0x15f   : > { %v793_v24 = vmul.f32 %v634_v41, %v2607_v59 }
 0x160   : > { %v636_v61 = vpop.f32.mrf.mxu0 }
 0x161   : > { %v794_v13 = vmul.f32 %v636_v61, %v2615_v0 }
 0x162   : > { %v638_v2 = vpop.f32.mrf.mxu0 }
 0x163   : > { %v795_v27 = vmul.f32 %v638_v2, %v2617_v4 }
 0x164   : > { %v640_v51 = vpop.f32.mrf.mxu0 }
 0x165   : > { %v796_v20 = vmul.f32 %v640_v51, %v2619_v6  ;;  %v857_v32 = vpack.c.bf16 %v795_v27, %v793_v24 }
 0x166   : > { %v644_v21 = vpop.f32.mrf.mxu0 }
 0x167   : > { %v858_v11 = vpack.c.bf16 %v796_v20, %v794_v13  ;;  %v797_v0 = vmul.f32 %v644_v21, %v2621_v12  ;;  %v3123_v13 = vld [vmem:[#allocation6_spill] sm:$0xff] }
 0x168   : > { %v646_v17 = vpop.f32.mrf.mxu0  ;;  %v3126_v21 = vld [vmem:[#allocation10_spill] sm:$0xff] }
 0x169   : > { %1314 = vmatprep.mubr.bf16.mxu1 %v858_v11  ;;  %v798_v10 = vmul.f32 %v646_v17, %v2628_v30  ;;  %v3125_v11 = vld [vmem:[#allocation5_spill] sm:$0xff] }
 0x16a   : > { %v648_v38 = vpop.f32.mrf.mxu0  ;;  %1315 = vmatmul.mubr.bf16.vlgmr.msra.gmra.mxu1 %v857_v32 }
 0x16b   : > { %v799_v58 = vmul.f32 %v648_v38, %v2630_v42  ;;  %v3124_v42 = vld [vmem:[#allocation7_spill] sm:$0xff] }
 0x16c   : > { %v650_v29 = vpop.f32.mrf.mxu0 }
 0x16d   : > { %v800_v4 = vmul.f32 %v650_v29, %v2633_v47  ;;  %v859_v2 = vpack.c.bf16 %v799_v58, %v797_v0  ;;  %v3127_v58 = vld [vmem:[#allocation9_spill] sm:$0xff] }
 0x16e   : > { %v654_v61 = vpop.f32.mrf.mxu0 }
 0x16f   : > { %v860_v6 = vpack.c.bf16 %v800_v4, %v798_v10  ;;  %v801_v30 = vmul.f32 %v654_v61, %v3125_v11  ;;  %v3130_v61 = vpack.c.bf16 %v2681_v25, %v2677_v62  ;;  %v3137_v11 = vld [vmem:[#allocation14_spill] sm:$0xff]  ;;  %v3142_v62 = vpack.c.bf16 %v2751_v49, %v2746_v45 }
 0x170   : > { %v656_v59 = vpop.f32.mrf.mxu0  ;;  %v3151_v45 = vpack.c.bf16 %v2806_v15, %v2802_v22  ;;  %v3153_v49 = vpack.c.bf16 %v2826_v1, %v2822_v60  ;;  %v3162_v22 = vpack.c.bf16 %v2880_v14, %v2878_v33 }
 0x171   : > { %1322 = vmatprep.mubr.bf16.mxu1 %v860_v6  ;;  %v802_v20 = vmul.f32 %v656_v59, %v3123_v13  ;;  %v3129_v6 = vld [vmem:[#allocation8_spill] sm:$0xff] }
 0x172   : > { %v658_v41 = vpop.f32.mrf.mxu0  ;;  %1323 = vmatmul.mubr.bf16.gmra.mxu1 %v859_v2 }
 0x173   : > { %v803_v27 = vmul.f32 %v658_v41, %v2643_v53  ;;  %v3128_v53 = vld [vmem:[#allocation11_spill] sm:$0xff] }
 0x174   : > { %v660_v51 = vpop.f32.mrf.mxu0 }
 0x175   : > { %v804_v24 = vmul.f32 %v660_v51, %v3124_v42  ;;  %v861_v29 = vpack.c.bf16 %v803_v27, %v801_v30  ;;  %v3131_v27 = vld [vmem:[#allocation13_spill] sm:$0xff]  ;;  %v3132_v51 = vld [vmem:[#allocation12_spill] sm:$0xff] }
 0x176   : > { %v664_v32 = vpop.f32.mrf.mxu0  ;;  %v3133_v13 = vpack.c.bf16 %v3131_v27, %v3132_v51 }
 0x177   : > { %v862_v47 = vpack.c.bf16 %v804_v24, %v802_v20  ;;  %v805_v2 = vmul.f32 %v664_v32, %v3129_v6  ;;  %v3134_v20 = vld [vmem:[#allocation16_spill] sm:$0xff]  ;;  %v3136_v24 = vld [vmem:[#allocation15_spill] sm:$0xff]  ;;  %v3139_v32 = vpack.c.bf16 %v2726_v18, %v2722_v52  ;;  %v3150_v18 = vpack.c.bf16 %v2782_v5, %v2780_v40 }
 0x178   : > { %v666_v12 = vpop.f32.mrf.mxu0  ;;  %v3135_v42 = vpack.c.bf16 %v2707_v28, %v3134_v20  ;;  %v3138_v30 = vpack.c.bf16 %v3136_v24, %v3137_v11  ;;  %v3156_v40 = vpack.c.bf16 %v2833_v63, %v2831_v56  ;;  %v3157_v5 = vpack.c.bf16 %v2858_v16, %v2854_v7  ;;  %v2984_v7 = vld [vmem:[%s3094_s5] ss:$0 sm:$0xff] }
 0x179   : > { %1330 = vmatprep.mubr.bf16.mxu1 %v862_v47  ;;  %v806_v4 = vmul.f32 %v666_v12, %v3127_v58  ;;  %v3140_v47 = vld [vmem:[#allocation17_spill] sm:$0xff]  ;;  %v3144_v12 = vld [vmem:[#allocation18_spill] sm:$0xff] }
 0x17a   : > { %v668_v10 = vpop.f32.mrf.mxu0  ;;  %1331 = vmatmul.mubr.bf16.gmra.mxu1 %v861_v29  ;;  %v3141_v25 = vpack.c.bf16 %v2717_v48, %v3140_v47  ;;  %v3143_v29 = vld [vmem:[#allocation19_spill] sm:$0xff]  ;;  %v3149_v48 = vpack.c.bf16 %v2792_v55, %v2787_v50  ;;  %v3158_v50 = vpack.c.bf16 %v2850_v35, %v2848_v34  ;;  %v3159_v55 = vpack.c.bf16 %v2870_v44, %v2866_v54 }
 0x17b   : > { %v807_v17 = vmul.f32 %v668_v10, %v3126_v21  ;;  %v3145_v28 = vpack.c.bf16 %v3143_v29, %v3144_v12  ;;  %v3146_v10 = vpack.c.bf16 %v2771_v46, %v2766_v39  ;;  %v3147_v21 = vld [vmem:[#allocation20_spill] sm:$0xff]  ;;  %v3152_v46 = vpack.c.bf16 %v2799_v9, %v2797_v8 }
 0x17c   : > { %v670_v38 = vpop.f32.mrf.mxu0  ;;  %v3148_v52 = vpack.c.bf16 %v2761_v31, %v3147_v21  ;;  %v3154_v31 = vpack.c.bf16 %v2817_v19, %v2815_v23  ;;  %v3155_v39 = vpack.c.bf16 %v2840_v36, %v2836_v43  ;;  %v3160_v8 = vpack.c.bf16 %v2864_v57, %v2862_v3 }
 0x17d   : > { %v808_v0 = vmul.f32 %v670_v38, %v3128_v53  ;;  %v863_v41 = vpack.c.bf16 %v807_v17, %v805_v2  ;;  %v3161_v9 = vpack.c.bf16 %v2888_v37, %v2884_v26 }
 0x17e   : > { %v2093_v15 = vpop.f32.mrf.mxu0 }
 0x17f   : > { %v864_v59 = vpack.c.bf16 %v808_v0, %v806_v4 }
 0x180   : > { %v1059_v23 = vpop.f32.mrf.mxu0 }
 0x181   : > { %1338 = vmatprep.mubr.bf16.mxu1 %v864_v59 }
 0x182   : > { %1339 = vmatmul.mubr.bf16.gmra.mxu1 %v863_v41  ;;  %v2094_v1 = vpop.f32.mrf.mxu0 }
 0x183   : > { %1346 = vmatprep.mubr.bf16.mxu1 %v3130_v61 }
 0x184   : > { %v1062_v36 = vpop.f32.mrf.mxu0 }
 0x186   : > { %v2097_v54 = vpop.f32.mrf.mxu0 }
 0x188   : > { %v1075_v38 = vpop.f32.mrf.mxu0 }
 0x18a   : > { %1347 = vmatmul.mubr.bf16.gmra.mxu1 %v3133_v13  ;;  %v2098_v2 = vpop.f32.mrf.mxu0 }
 0x18b   : > { %1354 = vmatprep.mubr.bf16.mxu1 %v3135_v42 }
 0x18c   : > { %v1078_v20 = vpop.f32.mrf.mxu0 }
 0x192   : > { %1355 = vmatmul.mubr.bf16.gmra.mxu1 %v3138_v30 }
 0x193   : > { %1362 = vmatprep.mubr.bf16.mxu1 %v3139_v32 }
 0x19a   : > { %1363 = vmatmul.mubr.bf16.gmra.mxu1 %v3141_v25 }
 0x19b   : > { %1370 = vmatprep.mubr.bf16.mxu1 %v3142_v62 }
 0x1a2   : > { %1371 = vmatmul.mubr.bf16.gmra.mxu1 %v3145_v28 }
 0x1a3   : > { %1378 = vmatprep.mubr.bf16.mxu1 %v3146_v10 }
 0x1aa   : > { %1379 = vmatmul.mubr.bf16.gmra.mxu1 %v3148_v52 }
 0x1ab   : > { %1386 = vmatprep.mubr.bf16.mxu1 %v3149_v48 }
 0x1b2   : > { %1387 = vmatmul.mubr.bf16.gmra.mxu1 %v3150_v18 }
 0x1b3   : > { %1394 = vmatprep.mubr.bf16.mxu1 %v3151_v45 }
 0x1ba   : > { %1395 = vmatmul.mubr.bf16.gmra.mxu1 %v3152_v46 }
 0x1bb   : > { %1402 = vmatprep.mubr.bf16.mxu1 %v3153_v49 }
 0x1c2   : > { %1403 = vmatmul.mubr.bf16.gmra.mxu1 %v3154_v31 }
 0x1c3   : > { %1410 = vmatprep.mubr.bf16.mxu1 %v3155_v39 }
 0x1c8   : > { %v2101_v47 = vpop.f32.mrf.mxu0 }
 0x1ca   : > { %1411 = vmatmul.mubr.bf16.gmra.mxu1 %v3156_v40  ;;  %v1091_v21 = vpop.f32.mrf.mxu0 }
 0x1cb   : > { %1418 = vmatprep.mubr.bf16.mxu1 %v3157_v5 }
 0x1cc   : > { %v2102_v49 = vpop.f32.mrf.mxu0 }
 0x1d2   : > { %1419 = vmatmul.mubr.bf16.gmra.mxu1 %v3158_v50 }
 0x1d3   : > { %1426 = vmatprep.mubr.bf16.mxu1 %v3159_v55 }
 0x1da   : > { %1427 = vmatmul.mubr.bf16.gmra.mxu1 %v3160_v8  ;;  %v1094_v8 = vpop.f32.mrf.mxu0 }
 0x1db   : > { %1434 = vmatprep.mubr.bf16.mxu1 %v3161_v9 }
 0x1e2   : > { %1435 = vmatmul.mubr.bf16.gmra.mxu1 %v3162_v22 }
 0x22a   : > { %v1993_v19 = vpop.f32.mrf.mxu1 }
 0x22c   : > { %v1994_v60 = vpop.f32.mrf.mxu1 }
 0x22d   : > { %v1995_v56 = vadd.f32 %v1994_v60, %v1993_v19  ;;  %v2105_v60 = vpop.f32.mrf.mxu0 }
 0x22e   : > { %v1996_v63 = vpop.f32.mrf.mxu1 }
 0x22f   : > { %v1317_v34 = vadd.f32 %v1995_v56, %v1059_v23 }
 0x230   : > { %v1997_v43 = vpop.f32.mrf.mxu1 }
 0x231   : > { %v1998_v35 = vadd.f32 %v1997_v43, %v1996_v63  ;;  %v1450_v44 = vadd.f32 %v2984_v7, %v1317_v34 }
 0x232   : > { %v1999_v16 = vpop.f32.mrf.mxu1 }
 0x233   : > { %v1320_v3 = vadd.f32 %v1998_v35, %v1062_v36  ;;  %v1107_v35 = vpop.f32.mrf.mxu0 }
 0x234   : > { %v2000_v57 = vpop.f32.mrf.mxu1 }
 0x235   : > { %v1451_v33 = vadd.f32 %v2984_v7, %v1320_v3  ;;  %v2001_v14 = vadd.f32 %v2000_v57, %v1999_v16 }
 0x236   : > { %v2002_v26 = vpop.f32.mrf.mxu1 }
 0x237   : > { %v1868_v37 = vpack.c.bf16 %v1451_v33, %v1450_v44  ;;  %v1325_v58 = vadd.f32 %v2093_v15, %v2001_v14  ;;  %v2106_v33 = vpop.f32.mrf.mxu0 }
 0x238   : > { %v2003_v17 = vpop.f32.mrf.mxu1 }
 0x239   : > { %1869 = vst [vmem:[%s2990_s15] sm:$0xff] %v1868_v37   ;;  %v2004_v4 = vadd.f32 %v2003_v17, %v2002_v26  ;;  %v1452_v59 = vadd.f32 %v2984_v7, %v1325_v58 }
 0x23a   : > { %v2005_v53 = vpop.f32.mrf.mxu1 }
 0x23b   : > { %v1328_v0 = vadd.f32 %v2094_v1, %v2004_v4  ;;  %v1110_v4 = vpop.f32.mrf.mxu0 }
 0x23c   : > { %v2006_v6 = vpop.f32.mrf.mxu1 }
 0x23d   : > { %v1453_v41 = vadd.f32 %v2984_v7, %v1328_v0  ;;  %v2007_v61 = vadd.f32 %v2006_v6, %v2005_v53 }
 0x23e   : > { %v2008_v27 = vpop.f32.mrf.mxu1 }
 0x23f   : > { %v1873_v51 = vpack.c.bf16 %v1453_v41, %v1452_v59  ;;  %v1333_v42 = vadd.f32 %v2007_v61, %v1075_v38  ;;  %v2109_v41 = vpop.f32.mrf.mxu0 }
 0x240   : > { %v2009_v13 = vpop.f32.mrf.mxu1 }
 0x241   : > { %1945 = vst [vmem:[%s2990_s15 + $0x8] sm:$0xff] %v1873_v51   ;;  %v2010_v24 = vadd.f32 %v2009_v13, %v2008_v27  ;;  %v1454_v25 = vadd.f32 %v2984_v7, %v1333_v42 }
 0x242   : > { %v2011_v11 = vpop.f32.mrf.mxu1 }
 0x243   : > { %v1336_v30 = vadd.f32 %v2010_v24, %v1078_v20  ;;  %v1123_v24 = vpop.f32.mrf.mxu0 }
 0x244   : > { %v2012_v32 = vpop.f32.mrf.mxu1 }
 0x245   : > { %v1455_v62 = vadd.f32 %v2984_v7, %v1336_v30  ;;  %v2013_v29 = vadd.f32 %v2012_v32, %v2011_v11 }
 0x246   : > { %v2014_v12 = vpop.f32.mrf.mxu1 }
 0x247   : > { %v1878_v28 = vpack.c.bf16 %v1455_v62, %v1454_v25  ;;  %v1341_v52 = vadd.f32 %v2097_v54, %v2013_v29  ;;  %v2110_v62 = vpop.f32.mrf.mxu0 }
 0x248   : > { %v2015_v10 = vpop.f32.mrf.mxu1 }
 0x249   : > { %1946 = vst [vmem:[%s2990_s15 + $0x10] sm:$0xff] %v1878_v28   ;;  %v2016_v48 = vadd.f32 %v2015_v10, %v2014_v12  ;;  %v1456_v31 = vadd.f32 %v2984_v7, %v1341_v52 }
 0x24a   : > { %v2017_v18 = vpop.f32.mrf.mxu1 }
 0x24b   : > { %v1344_v45 = vadd.f32 %v2098_v2, %v2016_v48  ;;  %v1126_v48 = vpop.f32.mrf.mxu0 }
 0x24c   : > { %v2018_v46 = vpop.f32.mrf.mxu1 }
 0x24d   : > { %v1457_v39 = vadd.f32 %v2984_v7, %v1344_v45  ;;  %v2019_v40 = vadd.f32 %v2018_v46, %v2017_v18 }
 0x24e   : > { %v2020_v5 = vpop.f32.mrf.mxu1 }
 0x24f   : > { %v1883_v50 = vpack.c.bf16 %v1457_v39, %v1456_v31  ;;  %v1349_v9 = vadd.f32 %v2019_v40, %v1091_v21  ;;  %v2113_v39 = vpop.f32.mrf.mxu0 }
 0x250   : > { %v2021_v55 = vpop.f32.mrf.mxu1 }
 0x251   : > { %1947 = vst [vmem:[%s2990_s15 + $0x18] sm:$0xff] %v1883_v50   ;;  %v2022_v22 = vadd.f32 %v2021_v55, %v2020_v5  ;;  %v1458_v1 = vadd.f32 %v2984_v7, %v1349_v9 }
 0x252   : > { %v2023_v15 = vpop.f32.mrf.mxu1 }
 0x253   : > { %v1352_v23 = vadd.f32 %v2022_v22, %v1094_v8  ;;  %v1139_v22 = vpop.f32.mrf.mxu0 }
 0x254   : > { %v2024_v19 = vpop.f32.mrf.mxu1 }
 0x255   : > { %v1459_v56 = vadd.f32 %v2984_v7, %v1352_v23  ;;  %v2025_v63 = vadd.f32 %v2024_v19, %v2023_v15 }
 0x256   : > { %v2026_v43 = vpop.f32.mrf.mxu1 }
 0x257   : > { %v1888_v36 = vpack.c.bf16 %v1459_v56, %v1458_v1  ;;  %v1357_v16 = vadd.f32 %v2101_v47, %v2025_v63  ;;  %v2114_v56 = vpop.f32.mrf.mxu0 }
 0x258   : > { %v2027_v34 = vpop.f32.mrf.mxu1 }
 0x259   : > { %1948 = vst [vmem:[%s2990_s15 + $0x20] sm:$0xff] %v1888_v36   ;;  %v2028_v3 = vadd.f32 %v2027_v34, %v2026_v43  ;;  %v1460_v14 = vadd.f32 %v2984_v7, %v1357_v16 }
 0x25a   : > { %v2029_v57 = vpop.f32.mrf.mxu1 }
 0x25b   : > { %v1360_v54 = vadd.f32 %v2102_v49, %v2028_v3  ;;  %v1142_v3 = vpop.f32.mrf.mxu0 }
 0x25c   : > { %v2030_v44 = vpop.f32.mrf.mxu1 }
 0x25d   : > { %v1461_v26 = vadd.f32 %v2984_v7, %v1360_v54  ;;  %v2031_v37 = vadd.f32 %v2030_v44, %v2029_v57 }
 0x25e   : > { %v2032_v17 = vpop.f32.mrf.mxu1 }
 0x25f   : > { %v1893_v38 = vpack.c.bf16 %v1461_v26, %v1460_v14  ;;  %v1365_v53 = vadd.f32 %v2031_v37, %v1107_v35  ;;  %v2117_v26 = vpop.f32.mrf.mxu0 }
 0x260   : > { %v2033_v58 = vpop.f32.mrf.mxu1 }
 0x261   : > { %1949 = vst [vmem:[%s2990_s15 + $0x28] sm:$0xff] %v1893_v38   ;;  %v2034_v0 = vadd.f32 %v2033_v58, %v2032_v17  ;;  %v1462_v61 = vadd.f32 %v2984_v7, %v1365_v53 }
 0x262   : > { %v2035_v6 = vpop.f32.mrf.mxu1 }
 0x263   : > { %v1368_v2 = vadd.f32 %v2034_v0, %v1110_v4  ;;  %v1155_v0 = vpop.f32.mrf.mxu0 }
 0x264   : > { %v2036_v59 = vpop.f32.mrf.mxu1 }
 0x265   : > { %v1463_v27 = vadd.f32 %v2984_v7, %v1368_v2  ;;  %v2037_v51 = vadd.f32 %v2036_v59, %v2035_v6 }
 0x266   : > { %v2038_v13 = vpop.f32.mrf.mxu1 }
 0x267   : > { %v1898_v20 = vpack.c.bf16 %v1463_v27, %v1462_v61  ;;  %v1373_v11 = vadd.f32 %v2105_v60, %v2037_v51  ;;  %v2118_v27 = vpop.f32.mrf.mxu0 }
 0x268   : > { %v2039_v42 = vpop.f32.mrf.mxu1 }
 0x269   : > { %1950 = vst [vmem:[%s2990_s15 + $0x30] sm:$0xff] %v1898_v20   ;;  %v2040_v30 = vadd.f32 %v2039_v42, %v2038_v13  ;;  %v1464_v29 = vadd.f32 %v2984_v7, %v1373_v11 }
 0x26a   : > { %v2041_v32 = vpop.f32.mrf.mxu1 }
 0x26b   : > { %v1376_v47 = vadd.f32 %v2106_v33, %v2040_v30  ;;  %v1158_v30 = vpop.f32.mrf.mxu0 }
 0x26c   : > { %v2042_v25 = vpop.f32.mrf.mxu1 }
 0x26d   : > { %v1465_v12 = vadd.f32 %v2984_v7, %v1376_v47  ;;  %v2043_v28 = vadd.f32 %v2042_v25, %v2041_v32 }
 0x26e   : > { %v2044_v10 = vpop.f32.mrf.mxu1 }
 0x26f   : > { %v1903_v21 = vpack.c.bf16 %v1465_v12, %v1464_v29  ;;  %v1381_v18 = vadd.f32 %v2043_v28, %v1123_v24  ;;  %v2121_v12 = vpop.f32.mrf.mxu0 }
 0x270   : > { %v2045_v52 = vpop.f32.mrf.mxu1 }
 0x271   : > { %1951 = vst [vmem:[%s2990_s15 + $0x38] sm:$0xff] %v1903_v21   ;;  %v2046_v45 = vadd.f32 %v2045_v52, %v2044_v10  ;;  %v1466_v40 = vadd.f32 %v2984_v7, %v1381_v18 }
 0x272   : > { %v2047_v46 = vpop.f32.mrf.mxu1 }
 0x273   : > { %v1384_v49 = vadd.f32 %v2046_v45, %v1126_v48  ;;  %v1171_v45 = vpop.f32.mrf.mxu0 }
 0x274   : > { %v2048_v31 = vpop.f32.mrf.mxu1 }
 0x275   : > { %v1467_v5 = vadd.f32 %v2984_v7, %v1384_v49  ;;  %v2049_v50 = vadd.f32 %v2048_v31, %v2047_v46 }
 0x276   : > { %v2050_v55 = vpop.f32.mrf.mxu1 }
 0x277   : > { %v1908_v8 = vpack.c.bf16 %v1467_v5, %v1466_v40  ;;  %v1389_v15 = vadd.f32 %v2109_v41, %v2049_v50  ;;  %v2122_v5 = vpop.f32.mrf.mxu0 }
 0x278   : > { %v2051_v9 = vpop.f32.mrf.mxu1 }
 0x279   : > { %1952 = vst [vmem:[%s2990_s15 + $0x40] sm:$0xff] %v1908_v8   ;;  %v2052_v23 = vadd.f32 %v2051_v9, %v2050_v55  ;;  %v1468_v63 = vadd.f32 %v2984_v7, %v1389_v15 }
 0x27a   : > { %v2053_v19 = vpop.f32.mrf.mxu1 }
 0x27b   : > { %v1392_v60 = vadd.f32 %v2110_v62, %v2052_v23  ;;  %v1174_v23 = vpop.f32.mrf.mxu0 }
 0x27c   : > { %v2054_v1 = vpop.f32.mrf.mxu1 }
 0x27d   : > { %v1469_v43 = vadd.f32 %v2984_v7, %v1392_v60  ;;  %v2055_v36 = vadd.f32 %v2054_v1, %v2053_v19 }
 0x27e   : > { %v2056_v34 = vpop.f32.mrf.mxu1 }
 0x27f   : > { %v1913_v35 = vpack.c.bf16 %v1469_v43, %v1468_v63  ;;  %v1397_v57 = vadd.f32 %v2055_v36, %v1139_v22 }
 0x280   : > { %v2057_v16 = vpop.f32.mrf.mxu1 }
 0x281   : > { %1953 = vst [vmem:[%s2990_s15 + $0x48] sm:$0xff] %v1913_v35   ;;  %v2058_v54 = vadd.f32 %v2057_v16, %v2056_v34  ;;  %v1470_v37 = vadd.f32 %v2984_v7, %v1397_v57 }
 0x282   : > { %v2059_v44 = vpop.f32.mrf.mxu1 }
 0x283   : > { %v1400_v33 = vadd.f32 %v2058_v54, %v1142_v3 }
 0x284   : > { %v2060_v14 = vpop.f32.mrf.mxu1 }
 0x285   : > { %v1471_v17 = vadd.f32 %v2984_v7, %v1400_v33  ;;  %v2061_v38 = vadd.f32 %v2060_v14, %v2059_v44 }
 0x286   : > { %v2062_v58 = vpop.f32.mrf.mxu1 }
 0x287   : > { %v1918_v4 = vpack.c.bf16 %v1471_v17, %v1470_v37  ;;  %v1405_v6 = vadd.f32 %v2113_v39, %v2061_v38 }
 0x288   : > { %v2063_v53 = vpop.f32.mrf.mxu1 }
 0x289   : > { %1954 = vst [vmem:[%s2990_s15 + $0x50] sm:$0xff] %v1918_v4   ;;  %v2064_v2 = vadd.f32 %v2063_v53, %v2062_v58  ;;  %v1472_v51 = vadd.f32 %v2984_v7, %v1405_v6 }
 0x28a   : > { %v2065_v59 = vpop.f32.mrf.mxu1 }
 0x28b   : > { %v1408_v41 = vadd.f32 %v2114_v56, %v2064_v2 }
 0x28c   : > { %v2066_v61 = vpop.f32.mrf.mxu1 }
 0x28d   : > { %v1473_v13 = vadd.f32 %v2984_v7, %v1408_v41  ;;  %v2067_v20 = vadd.f32 %v2066_v61, %v2065_v59 }
 0x28e   : > { %v2068_v42 = vpop.f32.mrf.mxu1 }
 0x28f   : > { %v1923_v24 = vpack.c.bf16 %v1473_v13, %v1472_v51  ;;  %v1413_v32 = vadd.f32 %v2067_v20, %v1155_v0 }
 0x290   : > { %v2069_v11 = vpop.f32.mrf.mxu1 }
 0x291   : > { %1955 = vst [vmem:[%s2990_s15 + $0x58] sm:$0xff] %v1923_v24   ;;  %v2070_v47 = vadd.f32 %v2069_v11, %v2068_v42  ;;  %v1474_v28 = vadd.f32 %v2984_v7, %v1413_v32 }
 0x292   : > { %v2071_v25 = vpop.f32.mrf.mxu1 }
 0x293   : > { %v1416_v62 = vadd.f32 %v2070_v47, %v1158_v30 }
 0x294   : > { %v2072_v29 = vpop.f32.mrf.mxu1 }
 0x295   : > { %v1475_v10 = vadd.f32 %v2984_v7, %v1416_v62  ;;  %v2073_v21 = vadd.f32 %v2072_v29, %v2071_v25 }
 0x296   : > { %v2074_v52 = vpop.f32.mrf.mxu1 }
 0x297   : > { %v1928_v48 = vpack.c.bf16 %v1475_v10, %v1474_v28  ;;  %v1421_v46 = vadd.f32 %v2117_v26, %v2073_v21 }
 0x298   : > { %v2075_v18 = vpop.f32.mrf.mxu1 }
 0x299   : > { %1956 = vst [vmem:[%s2990_s15 + $0x60] sm:$0xff] %v1928_v48   ;;  %v2076_v49 = vadd.f32 %v2075_v18, %v2074_v52  ;;  %v1476_v50 = vadd.f32 %v2984_v7, %v1421_v46 }
 0x29a   : > { %v2077_v31 = vpop.f32.mrf.mxu1 }
 0x29b   : > { %v1424_v39 = vadd.f32 %v2118_v27, %v2076_v49 }
 0x29c   : > { %v2078_v40 = vpop.f32.mrf.mxu1 }
 0x29d   : > { %v1477_v55 = vadd.f32 %v2984_v7, %v1424_v39  ;;  %v2079_v8 = vadd.f32 %v2078_v40, %v2077_v31 }
 0x29e   : > { %v2080_v9 = vpop.f32.mrf.mxu1 }
 0x29f   : > { %v1933_v22 = vpack.c.bf16 %v1477_v55, %v1476_v50  ;;  %v1429_v19 = vadd.f32 %v2079_v8, %v1171_v45 }
 0x2a0   : > { %v2081_v15 = vpop.f32.mrf.mxu1 }
 0x2a1   : > { %1957 = vst [vmem:[%s2990_s15 + $0x68] sm:$0xff] %v1933_v22   ;;  %v2082_v60 = vadd.f32 %v2081_v15, %v2080_v9  ;;  %v1478_v43 = vadd.f32 %v2984_v7, %v1429_v19 }
 0x2a2   : > { %v2083_v1 = vpop.f32.mrf.mxu1 }
 0x2a3   : > { %v1432_v56 = vadd.f32 %v2082_v60, %v1174_v23 }
 0x2a4   : > { %v2084_v63 = vpop.f32.mrf.mxu1 }
 0x2a5   : > { %v1479_v36 = vadd.f32 %v2984_v7, %v1432_v56  ;;  %v2085_v34 = vadd.f32 %v2084_v63, %v2083_v1 }
 0x2a6   : > { %v2086_v35 = vpop.f32.mrf.mxu1 }
 0x2a7   : > { %v1938_v16 = vpack.c.bf16 %v1479_v36, %v1478_v43  ;;  %v1437_v57 = vadd.f32 %v2121_v12, %v2085_v34 }
 0x2a8   : > { %v2087_v3 = vpop.f32.mrf.mxu1 }
 0x2a9   : > { %1958 = vst [vmem:[%s2990_s15 + $0x70] sm:$0xff] %v1938_v16   ;;  %v2088_v54 = vadd.f32 %v2087_v3, %v2086_v35  ;;  %v1480_v33 = vadd.f32 %v2984_v7, %v1437_v57 }
 0x2ab   : > { %v1440_v44 = vadd.f32 %v2122_v5, %v2088_v54 }
 0x2ad   : > { %v1481_v14 = vadd.f32 %v2984_v7, %v1440_v44 }
 0x2af   : > { %v1943_v26 = vpack.c.bf16 %v1481_v14, %v1480_v33 }
 0x2b1   : > { %1959 = vst [vmem:[%s2990_s15 + $0x78] sm:$0xff] %v1943_v26  }
 0x2b2   : > { %2203 = shalt.err (!%p2200_p3)
}
 0x2b3   : > { %s2204_s10 = scalar_lea.hbm %s3042_s20, 2048  ;;  %s2208_s13 = scalar_lea.hbm %s3095_s6, 8192 }
 0x2b4   : > { %p2205_p4 = scmp.ne.s32.totalorder %s3042_s20, %s2204_s10  ;;  %p2209_p9 = scmp.lt.s32.totalorder %s3042_s20, %s3095_s6 }
 0x2b5   : > { %p2210_p10 = scmp.lt.s32.totalorder %s2208_s13, %s2204_s10 }
 0x2b6   : > { %p2206_p7 = pnand %p2205_p4, %p2329_p5 }
 0x2b7   : > { %p2211_p11 = por %p2210_p10, %p2209_p9 }
 0x2b8   : > { %p2207_p8 = pneg %p2206_p7 }
 0x2ba   : > { %p2212_p12 = pnand %p2211_p11, %p2207_p8 }
 0x2bc   : > { %2215 = shalt.err (!%p2212_p12)
}
 0x2bd   : > { %s2254_s16 = smov 64   ;;  %s2255_s18 = smov 4  }
 0x2be   : > { %2125 = dma.vmem_to_hbm [thread:$0]  (%p2329_p5), %s3044_s17, 2048, %s3042_s20, %s3049_s26, %s2254_s16, %s2254_s16, %s2255_s18  }
 0x2bf PF: > { %p2131_p13 = scmp.ge.s32.totalorder %s2250_s24, 2  ;;  %s1671_s19 = sand.u32 1, %s2238_s21  }
 0x2c0   : > { %s1672_s25 = scalar_lea.sflag [#allocation3], %s1671_s19 }
 0x2c1   : > { %p2128_p0 = pnand %p2131_p13, %p2333_p6 }
 0x2c3   : > { %p2129_p1 = pneg %p2128_p0 }
 0x2c5   : > { %2233 = dma.done.wait (%p2129_p1), %s1672_s25, 2048  }
 0x2c6   : > { %2235 = vsyncadd (%p2129_p1), %s1672_s25, 4294965248  ;;  %p16_p2 = scmp.ge.s32.totalorder %s2316_s27, 6   ;;  %s3163_s21 = smov %s2242_s22 }
 0x2c7   : > { %s3164_s22 = smov %s2246_s23  ;;  %s3165_s23 = smov %s2327_s30 }
 0x2c8   : > { %s3166_s24 = smov %s2316_s27  ;;  %18 = sbr.rel (!%p16_p2) target bundleno = 3 (0x3), region = 79 }
 0x2cd   :  { %1677 = vsyncpa [#allocation3], 1 }
 0x2ce   :  { %1679 = vsyncpa [#allocation3 + $0x1], 1 }

</bundles_post_ra>
